<compile_context>
chip_gen: v7x
topology: tpu7x:2x2x1
jax: 0.10.0
libtpu: 0.0.40
codegen_flags: <defaults>
</compile_context>

<pallas_src>
import jax
import jax.numpy as jnp
from jax.experimental import pallas as pl
from jax.experimental.pallas import tpu as pltpu


def _round_up(x, m):
    return (x + m - 1) // m * m


def mlp_kernel(x_ref, w1_ref, b1_ref, w2_ref, b2_ref, w3_ref, b3_ref, o_ref):
    # Layer 1: f32 x-tile @ f32 w1 (MXU), f32 bias-add + ReLU (VPU).
    h = jnp.dot(x_ref[...], w1_ref[...], preferred_element_type=jnp.float32)
    h = jnp.maximum(h + b1_ref[...], 0.0)
    # Layer 2.
    h = jnp.dot(h, w2_ref[...], preferred_element_type=jnp.float32)
    h = jnp.maximum(h + b2_ref[...], 0.0)
    # Layer 3: narrow (2-column) output; store slot is nowhere near binding.
    out = jnp.dot(h, w3_ref[...], preferred_element_type=jnp.float32)
    o_ref[...] = (out + b3_ref[...]).astype(o_ref.dtype)


def mlp_forward(x, params, *, tile_b=8192):
    """Fused MLP forward. x: f32[B, F]; params: [(w, b), ...] with w=(in,out), b=(1,out)."""
    (w1, b1), (w2, b2), (w3, b3) = params
    B, F = x.shape
    out_features = w3.shape[1]

    # Batch tile: multiple of 8 sublanes, no larger than needed for B.
    tile_b = _round_up(max(8, tile_b), 8)
    tile_b = min(tile_b, _round_up(B, 8))

    grid = (pl.cdiv(B, tile_b),)  # ragged last block handled by Pallas masking
    const = lambda shape: pl.BlockSpec(shape, lambda i: (0,) * len(shape))

    out = pl.pallas_call(
        mlp_kernel,
        out_shape=jax.ShapeDtypeStruct((B, out_features), jnp.float32),
        grid=grid,
        in_specs=[
            pl.BlockSpec((tile_b, F), lambda i: (i, 0)),   # x: streamed per tile
            const(w1.shape), const(b1.shape),              # weights/biases: VMEM-resident
            const(w2.shape), const(b2.shape),
            const(w3.shape), const(b3.shape),
        ],
        # Last dim (out_features=2) equals the full array dim -> legal block shape,
        # and the narrow output minimizes HBM writeback on this mem-bound kernel.
        out_specs=pl.BlockSpec((tile_b, out_features), lambda i: (i, 0)),
        compiler_params=pltpu.CompilerParams(
            dimension_semantics=("parallel",)),            # megacore sharding on v7x
    )(x, w1, b1, w2, b2, w3, b3)

    return out


def init_linear(key, in_features, out_features):
    # PyTorch nn.Linear default init: U(-1/sqrt(in), 1/sqrt(in)) for W and b.
    kw, kb = jax.random.split(key)
    bound = 1.0 / jnp.sqrt(jnp.float32(in_features))
    # Stored as (in, out): transpose of PyTorch's (out, in).
    w = jax.random.uniform(kw, (in_features, out_features), jnp.float32, -bound, bound)
    b = jax.random.uniform(kb, (1, out_features), jnp.float32, -bound, bound)
    return w, b


def init_mlp(key, input_size, hidden_layers, neurons_per_layer, out_size=2):
    params = []
    in_features = input_size
    for _ in range(hidden_layers):
        key, sub = jax.random.split(key)
        params.append(init_linear(sub, in_features, neurons_per_layer))
        in_features = neurons_per_layer
    key, sub = jax.random.split(key)
    params.append(init_linear(sub, in_features, out_size))
    return params


if __name__ == "__main__":
    input_size = 16
    hidden_layers = 2
    neurons_per_layer = 32
    batch = 520        # not a multiple of the tile -> exercises the ragged last block
    tile_b = 128       # small tile so the test exercises a multi-step grid

    key = jax.random.PRNGKey(0)
    key, xkey = jax.random.split(key)
    x = jax.random.normal(xkey, (batch, input_size), jnp.float32)

    params = init_mlp(key, input_size, hidden_layers, neurons_per_layer)

    out = mlp_forward(x, params, tile_b=tile_b)
    jax.block_until_ready(out)
    assert out.shape == (batch, 2)

    # Pure f32 reference (same math as the PyTorch module's forward).
    (w1, b1), (w2, b2), (w3, b3) = params
    h = jnp.maximum(jnp.dot(x, w1) + b1, 0.0)
    h = jnp.maximum(jnp.dot(h, w2) + b2, 0.0)
    ref = jnp.dot(h, w3) + b3
    assert jnp.allclose(out, ref, atol=1e-4, rtol=1e-4), float(jnp.max(jnp.abs(out - ref)))

    print("KERNEL_OK")
</pallas_src>

<mosaic_0001>
module attributes {stable_mosaic.version = 11 : i64} {
  func.func @mlp_kernel(%arg0: i32, %arg1: memref<128x16xf32, #tpu.memory_space<vmem>>, %arg2: memref<16x32xf32, #tpu.memory_space<vmem>>, %arg3: memref<1x32xf32, #tpu.memory_space<vmem>>, %arg4: memref<32x32xf32, #tpu.memory_space<vmem>>, %arg5: memref<1x32xf32, #tpu.memory_space<vmem>>, %arg6: memref<32x2xf32, #tpu.memory_space<vmem>>, %arg7: memref<1x2xf32, #tpu.memory_space<vmem>>, %arg8: memref<128x2xf32, #tpu.memory_space<vmem>>) attributes {dimension_semantics = [#tpu.dimension_semantics<parallel>], iteration_bounds = array<i64: 5>, scalar_prefetch = 0 : i64, scratch_operands = 0 : i64, tpu.core_type = #tpu.core_type<tc>, window_params = [{transform_indices = @transform_0, window_bounds = array<i64: 128, 16>}, {pipeline_mode = #tpu.pipeline_mode<synchronous>, transform_indices = @transform_1, window_bounds = array<i64: 16, 32>}, {pipeline_mode = #tpu.pipeline_mode<synchronous>, transform_indices = @transform_2, window_bounds = array<i64: 1, 32>}, {pipeline_mode = #tpu.pipeline_mode<synchronous>, transform_indices = @transform_3, window_bounds = array<i64: 32, 32>}, {pipeline_mode = #tpu.pipeline_mode<synchronous>, transform_indices = @transform_4, window_bounds = array<i64: 1, 32>}, {pipeline_mode = #tpu.pipeline_mode<synchronous>, transform_indices = @transform_5, window_bounds = array<i64: 32, 2>}, {pipeline_mode = #tpu.pipeline_mode<synchronous>, transform_indices = @transform_6, window_bounds = array<i64: 1, 2>}, {transform_indices = @transform_7, window_bounds = array<i64: 128, 2>}]} {
    %c0 = arith.constant 0 : index
    %c0_0 = arith.constant 0 : index
    %0 = vector.load %arg1[%c0, %c0_0] : memref<128x16xf32, #tpu.memory_space<vmem>>, vector<128x16xf32>
    %c0_1 = arith.constant 0 : index
    %c0_2 = arith.constant 0 : index
    %1 = vector.load %arg2[%c0_1, %c0_2] : memref<16x32xf32, #tpu.memory_space<vmem>>, vector<16x32xf32>
    %cst = arith.constant dense<0.000000e+00> : vector<128x32xf32>
    %2 = tpu.matmul %0, %1, %cst {dimension_numbers = #tpu.dot_dimension_numbers<[1], [0], [0], [1], [0, 0, 1, 1], [], []>} : vector<128x16xf32>, vector<16x32xf32>, vector<128x32xf32> -> vector<128x32xf32>
    %c0_3 = arith.constant 0 : index
    %c0_4 = arith.constant 0 : index
    %3 = vector.load %arg3[%c0_3, %c0_4] : memref<1x32xf32, #tpu.memory_space<vmem>>, vector<1x32xf32>
    %4 = vector.broadcast %3 : vector<1x32xf32> to vector<128x32xf32>
    %5 = arith.addf %2, %4 : vector<128x32xf32>
    %cst_5 = arith.constant 0.000000e+00 : f32
    %6 = vector.broadcast %cst_5 : f32 to vector<128x32xf32>
    %7 = arith.maximumf %5, %6 : vector<128x32xf32>
    %c0_6 = arith.constant 0 : index
    %c0_7 = arith.constant 0 : index
    %8 = vector.load %arg4[%c0_6, %c0_7] : memref<32x32xf32, #tpu.memory_space<vmem>>, vector<32x32xf32>
    %cst_8 = arith.constant dense<0.000000e+00> : vector<128x32xf32>
    %9 = tpu.matmul %7, %8, %cst_8 {dimension_numbers = #tpu.dot_dimension_numbers<[1], [0], [0], [1], [0, 0, 1, 1], [], []>} : vector<128x32xf32>, vector<32x32xf32>, vector<128x32xf32> -> vector<128x32xf32>
    %c0_9 = arith.constant 0 : index
    %c0_10 = arith.constant 0 : index
    %10 = vector.load %arg5[%c0_9, %c0_10] : memref<1x32xf32, #tpu.memory_space<vmem>>, vector<1x32xf32>
    %11 = vector.broadcast %10 : vector<1x32xf32> to vector<128x32xf32>
    %12 = arith.addf %9, %11 : vector<128x32xf32>
    %cst_11 = arith.constant 0.000000e+00 : f32
    %13 = vector.broadcast %cst_11 : f32 to vector<128x32xf32>
    %14 = arith.maximumf %12, %13 : vector<128x32xf32>
    %c0_12 = arith.constant 0 : index
    %c0_13 = arith.constant 0 : index
    %15 = vector.load %arg6[%c0_12, %c0_13] : memref<32x2xf32, #tpu.memory_space<vmem>>, vector<32x2xf32>
    %cst_14 = arith.constant dense<0.000000e+00> : vector<128x2xf32>
    %16 = tpu.matmul %14, %15, %cst_14 {dimension_numbers = #tpu.dot_dimension_numbers<[1], [0], [0], [1], [0, 0, 1, 1], [], []>} : vector<128x32xf32>, vector<32x2xf32>, vector<128x2xf32> -> vector<128x2xf32>
    %c0_15 = arith.constant 0 : index
    %c0_16 = arith.constant 0 : index
    %17 = vector.load %arg7[%c0_15, %c0_16] : memref<1x2xf32, #tpu.memory_space<vmem>>, vector<1x2xf32>
    %18 = vector.broadcast %17 : vector<1x2xf32> to vector<128x2xf32>
    %19 = arith.addf %16, %18 : vector<128x2xf32>
    %c0_17 = arith.constant 0 : index
    %c0_18 = arith.constant 0 : index
    %20 = vector.load %arg8[%c0_17, %c0_18] : memref<128x2xf32, #tpu.memory_space<vmem>>, vector<128x2xf32>
    tpu.vector_store %arg8[%c0_17, %c0_18], %19 {strides = array<i32>} : memref<128x2xf32, #tpu.memory_space<vmem>>, vector<128x2xf32>,
    return
  }
  func.func @transform_0(%arg0: i32) -> (i32, i32) {
    %c0_i32 = arith.constant 0 : i32
    %c0_i32_0 = arith.constant 0 : i32
    return %arg0, %c0_i32 : i32, i32
  }
  func.func @transform_1(%arg0: i32) -> (i32, i32) {
    %c0_i32 = arith.constant 0 : i32
    %c0_i32_0 = arith.constant 0 : i32
    %c0_i32_1 = arith.constant 0 : i32
    return %c0_i32, %c0_i32_0 : i32, i32
  }
  func.func @transform_2(%arg0: i32) -> (i32, i32) {
    %c0_i32 = arith.constant 0 : i32
    %c0_i32_0 = arith.constant 0 : i32
    %c0_i32_1 = arith.constant 0 : i32
    return %c0_i32, %c0_i32_0 : i32, i32
  }
  func.func @transform_3(%arg0: i32) -> (i32, i32) {
    %c0_i32 = arith.constant 0 : i32
    %c0_i32_0 = arith.constant 0 : i32
    %c0_i32_1 = arith.constant 0 : i32
    return %c0_i32, %c0_i32_0 : i32, i32
  }
  func.func @transform_4(%arg0: i32) -> (i32, i32) {
    %c0_i32 = arith.constant 0 : i32
    %c0_i32_0 = arith.constant 0 : i32
    %c0_i32_1 = arith.constant 0 : i32
    return %c0_i32, %c0_i32_0 : i32, i32
  }
  func.func @transform_5(%arg0: i32) -> (i32, i32) {
    %c0_i32 = arith.constant 0 : i32
    %c0_i32_0 = arith.constant 0 : i32
    %c0_i32_1 = arith.constant 0 : i32
    return %c0_i32, %c0_i32_0 : i32, i32
  }
  func.func @transform_6(%arg0: i32) -> (i32, i32) {
    %c0_i32 = arith.constant 0 : i32
    %c0_i32_0 = arith.constant 0 : i32
    %c0_i32_1 = arith.constant 0 : i32
    return %c0_i32, %c0_i32_0 : i32, i32
  }
  func.func @transform_7(%arg0: i32) -> (i32, i32) {
    %c0_i32 = arith.constant 0 : i32
    %c0_i32_0 = arith.constant 0 : i32
    return %arg0, %c0_i32 : i32, i32
  }
}

</mosaic_0001>

<bundles_post_ra>
// kernel: tpu_custom_call.1
= control target key start
LH: loop header
LB: loop body
LE: loop exit
PB: predicated region body
PF: predicated region fallthrough
CT: control target
= control target key end

     0   :  { %s1718_s24 = smov 0   ;;  %s1720_s25 = smov 0   ;;  %s1995_s0 = inlined_call_operand.vmem [shape: f32[520,16], index: 0, kind: input, shape index: {}]   ;;  %s1996_s1 = inlined_call_operand.vmem [shape: f32[16,32], index: 1, kind: input, shape index: {}]   ;;  %s1997_s2 = inlined_call_operand.vmem [shape: f32[1,32], index: 2, kind: input, shape index: {}]   ;;  %s1998_s3 = inlined_call_operand.vmem [shape: f32[32,32], index: 3, kind: input, shape index: {}]   ;;  %s1999_s4 = inlined_call_operand.vmem [shape: f32[1,32], index: 4, kind: input, shape index: {}]   ;;  %s2000_s5 = inlined_call_operand.vmem [shape: f32[32,2], index: 5, kind: input, shape index: {}]   ;;  %s2001_s6 = inlined_call_operand.vmem [shape: f32[1,2], index: 6, kind: input, shape index: {}]   ;;  %s2002_s7 = inlined_call_operand.vmem [shape: f32[520,2], index: 7, kind: output, shape index: {}]  }
   0x1   :  { %s1722_s26 = smov 0  }
   0x2 LB: > { %s1731_s27 = sadd.s32 4294967295, %s1644_s26   ;;  %s1733_s28 = sadd.s32 1, %s1644_s26   ;;  %s1644_s26 = sphi %s1722_s26, %s2009_s26   ;;  %s1640_s25 = sphi %s1720_s25, %s2008_s25   ;;  %s1636_s24 = sphi %s1718_s24, %s2007_s24  }
   0x3   : > { %s173_s29 = ssub.s32 %s1644_s26, %s1733_s28  ;;  %s176_s30 = sadd.s32 1, %s1640_s25 }
   0x4   : > { %p174_p0 = scmp.eq.s32.totalorder %s173_s29, 0  ;;  %p186_p1 = scmp.ne.s32.totalorder %s1640_s25, %s1636_s24 }
   0x5   : > { %p187_p2 = scmp.eq.s32.totalorder %s1731_s27, 4  ;;  %p1255_p3 = scmp.ge.s32.totalorder %s1644_s26, 1 }
   0x6   : > { %s1741_s8 = scalar_select %p174_p0, %s1640_s25, %s176_s30  }
   0x7   : > { %p1743_p4 = por %p187_p2, %p186_p1  ;;  %p246_p5 = scmp.lt.s32.totalorder %s1644_s26, 6 }
   0x9   : > { %p247_p6 = pnand %p1255_p3, %p246_p5 }
   0xa   : > { %v316_v0 = vld [vmem:[%s1996_s1] sm:$0xff] (!%p247_p6)  ;;  %v317_v1 = vld [vmem:[%s1996_s1 + $0x8] sm:$0xff] (!%p247_p6)  ;;  %s1754_s14 = sshll.u32 (!%p247_p6), %s1731_s27, 4  ;;  %vm325_vm0 = vcmask (!%p247_p6), 130048   ;;  %v537_v6 = vld [vmem:[%s1998_s3 + $0x10] sm:$0xff] (!%p247_p6)  ;;  %vm546_vm1 = vcmask (!%p247_p6), 261120  }
   0xb   : > { %250 = sbr.rel (%p247_p6) target bundleno = 753 (0x2f1), region = 48  ;;  %v535_v2 = vld [vmem:[%s1998_s3] sm:$0xff] (!%p247_p6)  ;;  %v1480_v3 = vpack.c.bf16 (!%p247_p6), %v317_v1, %v316_v0  ;;  %p286_p7 = scmp.lt.s32.totalorder (!%p247_p6), %s1754_s14, 64  ;;  %v536_v4 = vld [vmem:[%s1998_s3 + $0x8] sm:$0xff] (!%p247_p6)  ;;  %v538_v7 = vld [vmem:[%s1998_s3 + $0x18] sm:$0xff] (!%p247_p6)  ;;  %vm960_vm2 = vcmask (!%p247_p6), 15360  }
   0xc   : > { %v1484_v5 = vpack.c.bf16 (!%p247_p6), %v536_v4, %v535_v2  ;;  %v1488_v12 = vpack.c.bf16 (!%p247_p6), %v538_v7, %v537_v6  ;;  %v756_v25 = vld [vmem:[%s2000_s5] sm:$0xff] (!%p247_p6)  ;;  %v757_v26 = vld [vmem:[%s2000_s5 + $0x8] sm:$0xff] (!%p247_p6)  ;;  %v758_v27 = vld [vmem:[%s2000_s5 + $0x10] sm:$0xff] (!%p247_p6)  ;;  %s278_s26 = sand.u32 (!%p247_p6), 1, %s1636_s24  }
   0xd   : > { %1481 = vmatprep.subr.bf16.mxu0 (!%p247_p6), %v1480_v3  ;;  %1500 = vmatprep.subr.bf16.mxu1 (!%p247_p6), %v1480_v3  ;;  %v1492_v28 = vpack.c.bf16 (!%p247_p6), %v757_v26, %v756_v25  ;;  %v759_v29 = vld [vmem:[%s2000_s5 + $0x18] sm:$0xff] (!%p247_p6)  ;;  %v1259_v31 = vld [vmem:[%s1997_s2] ss:$0 sm:$0xff] (!%p247_p6)  ;;  %s1256_s29 = sshll.u32 (!%p247_p6), %s278_s26, 7 }
   0xe   : > { %1483 = vmatpush3.bf16.msra.mxu0 (!%p247_p6), %v1480_v3  ;;  %1501 = vmatpush3.bf16.msra.mxu1 (!%p247_p6), %v1480_v3  ;;  %v1496_v30 = vpack.c.bf16 (!%p247_p6), %v759_v29, %v758_v27  ;;  %s1861_s11 = scalar_lea.vmem (!%p247_p6), [#allocation2], %s1256_s29  }
   0xf   : > { %1485 = vmatprep.subr.bf16.mxu1 (!%p247_p6), %v1484_v5  ;;  %1493 = vmatprep.subr.bf16.mxu0 (!%p247_p6), %v1492_v28 }
  0x12   : > { %s287_s19 = scalar_select %p286_p7, %s1754_s14, 64 }
  0x13   : > { %s985_s24 = ssub.s32 (%p1743_p4), 65, %s1754_s14  ;;  %s1327_s12 = sshll.u32 (%p1743_p4), %s1731_s27, 7 }
  0x14   : > { %s1258_s20 = sshll.u32 %s287_s19, 3  ;;  %p986_p8 = scmp.lt.s32.totalorder (%p1743_p4), %s985_s24, 16 }
  0x15   : > { %s1767_s23 = scalar_lea.vmem %s1995_s0, %s1258_s20  ;;  %s1902_s16 = scalar_lea.vmem (%p1743_p4), %s2002_s7, %s1327_s12  }
  0x16   : > { %v300_v8 = vld [vmem:[%s1767_s23] sm:$0xff]  ;;  %v301_v9 = vld [vmem:[%s1767_s23 + $0x8] sm:$0xff]  ;;  %v302_v10 = vld [vmem:[%s1767_s23 + $0x10] sm:$0xff] }
  0x17   : > { %1392 = vmatprep.mubr.msk.f32.mxu0 %vm325_vm0, %v300_v8  ;;  %v308_v11 = vld [vmem:[%s1767_s23 + $0x40] sm:$0xff]  ;;  %v303_v13 = vld [vmem:[%s1767_s23 + $0x18] sm:$0xff]  ;;  %v309_v14 = vld [vmem:[%s1767_s23 + $0x48] sm:$0xff] }
  0x18   : > { %1393 = vmatmul.mubr.msk.f32.vlgmr.msra.gmra.mrb[0].mxu0 %vm325_vm0, %v301_v9  ;;  %1404 = vmatprep.mubr.msk.f32.mxu1 %vm325_vm0, %v308_v11  ;;  %v310_v15 = vld [vmem:[%s1767_s23 + $0x50] sm:$0xff]  ;;  %v304_v16 = vld [vmem:[%s1767_s23 + $0x20] sm:$0xff]  ;;  %v311_v17 = vld [vmem:[%s1767_s23 + $0x58] sm:$0xff] }
  0x19   : > { %1395 = vmatprep.mubr.msk.f32.mxu0 %vm325_vm0, %v302_v10  ;;  %1405 = vmatmul.mubr.msk.f32.vlgmr.msra.gmra.mrb[0].mxu1 %vm325_vm0, %v309_v14  ;;  %v312_v18 = vld [vmem:[%s1767_s23 + $0x60] sm:$0xff]  ;;  %v305_v19 = vld [vmem:[%s1767_s23 + $0x28] sm:$0xff]  ;;  %v306_v20 = vld [vmem:[%s1767_s23 + $0x30] sm:$0xff] }
  0x1a   : > { %1407 = vmatprep.mubr.msk.f32.mxu1 %vm325_vm0, %v310_v15  ;;  %1487 = vmatpush3.bf16.msra.mxu1 %v1484_v5  ;;  %v313_v21 = vld [vmem:[%s1767_s23 + $0x68] sm:$0xff]  ;;  %v314_v22 = vld [vmem:[%s1767_s23 + $0x70] sm:$0xff]  ;;  %v307_v23 = vld [vmem:[%s1767_s23 + $0x38] sm:$0xff] }
  0x1b   : > { %1489 = vmatprep.subr.bf16.mxu1 %v1488_v12  ;;  %v315_v24 = vld [vmem:[%s1767_s23 + $0x78] sm:$0xff]  ;;  %1495 = vmatpush3.bf16.msra.mxu0 %v1492_v28 }
  0x1c   : > { %1396 = vmatmul.mubr.msk.f32.gmra.mrb[2].mxu0 %vm325_vm0, %v303_v13  ;;  %1497 = vmatprep.subr.bf16.mxu0 %v1496_v30 }
  0x1d   : > { %1398 = vmatprep.mubr.msk.f32.mxu0 %vm325_vm0, %v304_v16  ;;  %1408 = vmatmul.mubr.msk.f32.gmra.mrb[2].mxu1 %vm325_vm0, %v311_v17  ;;  %v1276_v16 = vld [vmem:[%s1999_s4] ss:$0 sm:$0xff] }
  0x1e   : > { %1410 = vmatprep.mubr.msk.f32.mxu1 %vm325_vm0, %v312_v18  ;;  %1491 = vmatpush3.bf16.msra.mxu1 %v1488_v12 }
  0x1f   : > { %1499 = vmatpush3.bf16.msra.mxu0 %v1496_v30 }
  0x20   : > { %1399 = vmatmul.mubr.msk.f32.gmra.mrb[4].mxu0 %vm325_vm0, %v305_v19 }
  0x21   : > { %1401 = vmatprep.mubr.msk.f32.mxu0 %vm325_vm0, %v306_v20  ;;  %1411 = vmatmul.mubr.msk.f32.gmra.mrb[4].mxu1 %vm325_vm0, %v313_v21 }
  0x22   : > { %1413 = vmatprep.mubr.msk.f32.mxu1 %vm325_vm0, %v314_v22 }
  0x24   : > { %1402 = vmatmul.mubr.msk.f32.gmra.mrb[6].mxu0 %vm325_vm0, %v307_v23 }
  0x25   : > { %1414 = vmatmul.mubr.msk.f32.gmra.mrb[6].mxu1 %vm325_vm0, %v315_v24 }
  0xeb   : > { %v1394_v32 = vpop.f32.mrb[0].mxu0 }
  0xec   : > { %v446_v33 = vadd.f32 %v1394_v32, %v1259_v31  ;;  %v440_v34 = vpop.f32.mrb[1].mxu0  ;;  %v1406_v36 = vpop.f32.mrb[0].mxu1 }
  0xed   : > { %v441_v35 = vadd.f32 %v1259_v31, %v440_v34  ;;  %v480_v37 = vpop.f32.mrb[1].mxu1  ;;  %v486_v3 = vadd.f32 %v1406_v36, %v1259_v31 }
  0xee   : > { %v520_v40 = vmax.f32 %v446_v33, 0.0  ;;  %v481_v56 = vadd.f32 %v1259_v31, %v480_v37 }
  0xef   : > { %v519_v38 = vmax.f32 %v441_v35, 0.0  ;;  %v1397_v39 = vpop.f32.mrb[2].mxu0  ;;  %v528_v6 = vmax.f32 %v486_v3, 0.0 }
  0xf0   : > { %v456_v41 = vadd.f32 %v1397_v39, %v1259_v31  ;;  %v450_v42 = vpop.f32.mrb[3].mxu0  ;;  %v1409_v44 = vpop.f32.mrb[2].mxu1  ;;  %v527_v0 = vmax.f32 %v481_v56, 0.0 }
  0xf1   : > { %v451_v43 = vadd.f32 %v1259_v31, %v450_v42  ;;  %1424 = vmatprep.mubr.msk.f32.mxu1 %vm546_vm1, %v519_v38  ;;  %v490_v45 = vpop.f32.mrb[3].mxu1  ;;  %v496_v7 = vadd.f32 %v1409_v44, %v1259_v31 }
  0xf2   : > { %1425 = vmatmul.mubr.msk.f32.vlgmr.msra.gmra.mrb[8].mxu1 %vm546_vm1, %v520_v40  ;;  %v522_v48 = vmax.f32 %v456_v41, 0.0  ;;  %v491_v1 = vadd.f32 %v1259_v31, %v490_v45 }
  0xf3   : > { %v521_v46 = vmax.f32 %v451_v43, 0.0  ;;  %v1400_v47 = vpop.f32.mrb[4].mxu0  ;;  %v530_v10 = vmax.f32 %v496_v7, 0.0 }
  0xf4   : > { %v466_v49 = vadd.f32 %v1400_v47, %v1259_v31  ;;  %v460_v50 = vpop.f32.mrb[5].mxu0  ;;  %v1412_v52 = vpop.f32.mrb[4].mxu1  ;;  %v529_v4 = vmax.f32 %v491_v1, 0.0  ;;  %v1293_v1 = vld [vmem:[%s2001_s6] ss:$0 sm:$0xff] }
  0xf5   : > { %v461_v51 = vadd.f32 %v1259_v31, %v460_v50  ;;  %1427 = vmatprep.mubr.msk.f32.mxu1 %vm546_vm1, %v521_v46  ;;  %v500_v53 = vpop.f32.mrb[5].mxu1  ;;  %v506_v11 = vadd.f32 %v1412_v52, %v1259_v31 }
  0xf6   : > { %1428 = vmatmul.mubr.msk.f32.gmra.mrb[10].mxu1 %vm546_vm1, %v522_v48  ;;  %v524_v57 = vmax.f32 %v466_v49, 0.0  ;;  %v501_v5 = vadd.f32 %v1259_v31, %v500_v53 }
  0xf7   : > { %v523_v54 = vmax.f32 %v461_v51, 0.0  ;;  %v1403_v55 = vpop.f32.mrb[6].mxu0  ;;  %v532_v13 = vmax.f32 %v506_v11, 0.0 }
  0xf8   : > { %v476_v58 = vadd.f32 %v1403_v55, %v1259_v31  ;;  %v470_v59 = vpop.f32.mrb[7].mxu0  ;;  %v1415_v61 = vpop.f32.mrb[6].mxu1  ;;  %v531_v8 = vmax.f32 %v501_v5, 0.0 }
  0xf9   : > { %v471_v60 = vadd.f32 %v1259_v31, %v470_v59  ;;  %1430 = vmatprep.mubr.msk.f32.mxu1 %vm546_vm1, %v523_v54  ;;  %v510_v62 = vpop.f32.mrb[7].mxu1  ;;  %v516_v14 = vadd.f32 %v1415_v61, %v1259_v31 }
  0xfa   : > { %1431 = vmatmul.mubr.msk.f32.gmra.mrb[12].mxu1 %vm546_vm1, %v524_v57  ;;  %v526_v2 = vmax.f32 %v476_v58, 0.0  ;;  %v511_v9 = vadd.f32 %v1259_v31, %v510_v62 }
  0xfb   : > { %v525_v63 = vmax.f32 %v471_v60, 0.0  ;;  %v534_v15 = vmax.f32 %v516_v14, 0.0 }
  0xfc   : > { %v533_v12 = vmax.f32 %v511_v9, 0.0 }
  0xfd   : > { %1433 = vmatprep.mubr.msk.f32.mxu1 %vm546_vm1, %v525_v63 }
  0xfe   : > { %1434 = vmatmul.mubr.msk.f32.gmra.mrb[14].mxu1 %vm546_vm1, %v526_v2 }
  0xff   : > { %1436 = vmatprep.mubr.msk.f32.mxu1 %vm546_vm1, %v527_v0 }
 0x102   : > { %1437 = vmatmul.mubr.msk.f32.gmra.mrb[16].mxu1 %vm546_vm1, %v528_v6 }
 0x103   : > { %1439 = vmatprep.mubr.msk.f32.mxu1 %vm546_vm1, %v529_v4 }
 0x106   : > { %1440 = vmatmul.mubr.msk.f32.gmra.mrb[18].mxu1 %vm546_vm1, %v530_v10 }
 0x107   : > { %1442 = vmatprep.mubr.msk.f32.mxu1 %vm546_vm1, %v531_v8 }
 0x10a   : > { %1443 = vmatmul.mubr.msk.f32.gmra.mrb[20].mxu1 %vm546_vm1, %v532_v13 }
 0x10b   : > { %1445 = vmatprep.mubr.msk.f32.mxu1 %vm546_vm1, %v533_v12 }
 0x10e   : > { %1446 = vmatmul.mubr.msk.f32.gmra.mrb[22].mxu1 %vm546_vm1, %v534_v15 }
 0x1c5   : > { %v1426_v17 = vpop.f32.mrb[8].mxu1 }
 0x1c6   : > { %v667_v18 = vadd.f32 %v1426_v17, %v1276_v16  ;;  %v661_v19 = vpop.f32.mrb[9].mxu1 }
 0x1c7   : > { %v662_v20 = vadd.f32 %v1276_v16, %v661_v19 }
 0x1c8   : > { %v741_v23 = vmax.f32 %v667_v18, 0.0 }
 0x1c9   : > { %v740_v21 = vmax.f32 %v662_v20, 0.0  ;;  %v1429_v22 = vpop.f32.mrb[10].mxu1 }
 0x1ca   : > { %v677_v24 = vadd.f32 %v1429_v22, %v1276_v16  ;;  %v671_v25 = vpop.f32.mrb[11].mxu1 }
 0x1cb   : > { %v672_v26 = vadd.f32 %v1276_v16, %v671_v25  ;;  %1456 = vmatprep.mubr.msk.f32.mxu0 %vm546_vm1, %v740_v21 }
 0x1cc   : > { %1457 = vmatmul.mubr.msk.f32.vlgmr.msra.gmra.mrb[8].mxu0 %vm546_vm1, %v741_v23  ;;  %v743_v29 = vmax.f32 %v677_v24, 0.0 }
 0x1cd   : > { %v742_v27 = vmax.f32 %v672_v26, 0.0  ;;  %v1432_v28 = vpop.f32.mrb[12].mxu1 }
 0x1ce   : > { %v687_v30 = vadd.f32 %v1432_v28, %v1276_v16  ;;  %v681_v31 = vpop.f32.mrb[13].mxu1 }
 0x1cf   : > { %v682_v32 = vadd.f32 %v1276_v16, %v681_v31  ;;  %1459 = vmatprep.mubr.msk.f32.mxu0 %vm546_vm1, %v742_v27 }
 0x1d0   : > { %1460 = vmatmul.mubr.msk.f32.gmra.mrb[10].mxu0 %vm546_vm1, %v743_v29  ;;  %v745_v35 = vmax.f32 %v687_v30, 0.0 }
 0x1d1   : > { %v744_v33 = vmax.f32 %v682_v32, 0.0  ;;  %v1435_v34 = vpop.f32.mrb[14].mxu1 }
 0x1d2   : > { %v697_v36 = vadd.f32 %v1435_v34, %v1276_v16  ;;  %v691_v37 = vpop.f32.mrb[15].mxu1 }
 0x1d3   : > { %v692_v38 = vadd.f32 %v1276_v16, %v691_v37  ;;  %1462 = vmatprep.mubr.msk.f32.mxu0 %vm546_vm1, %v744_v33 }
 0x1d4   : > { %1463 = vmatmul.mubr.msk.f32.gmra.mrb[12].mxu0 %vm546_vm1, %v745_v35  ;;  %v747_v41 = vmax.f32 %v697_v36, 0.0 }
 0x1d5   : > { %v746_v39 = vmax.f32 %v692_v38, 0.0  ;;  %v1438_v40 = vpop.f32.mrb[16].mxu1 }
 0x1d6   : > { %v707_v42 = vadd.f32 %v1438_v40, %v1276_v16  ;;  %v701_v43 = vpop.f32.mrb[17].mxu1 }
 0x1d7   : > { %v702_v44 = vadd.f32 %v1276_v16, %v701_v43  ;;  %1465 = vmatprep.mubr.msk.f32.mxu0 %vm546_vm1, %v746_v39 }
 0x1d8   : > { %1466 = vmatmul.mubr.msk.f32.gmra.mrb[14].mxu0 %vm546_vm1, %v747_v41  ;;  %v749_v47 = vmax.f32 %v707_v42, 0.0 }
 0x1d9   : > { %v748_v45 = vmax.f32 %v702_v44, 0.0  ;;  %v1441_v46 = vpop.f32.mrb[18].mxu1 }
 0x1da   : > { %v717_v48 = vadd.f32 %v1441_v46, %v1276_v16  ;;  %v711_v49 = vpop.f32.mrb[19].mxu1 }
 0x1db   : > { %v712_v50 = vadd.f32 %v1276_v16, %v711_v49  ;;  %1468 = vmatprep.mubr.msk.f32.mxu0 %vm546_vm1, %v748_v45 }
 0x1dc   : > { %1469 = vmatmul.mubr.msk.f32.gmra.mrb[16].mxu0 %vm546_vm1, %v749_v47  ;;  %v751_v53 = vmax.f32 %v717_v48, 0.0 }
 0x1dd   : > { %v750_v51 = vmax.f32 %v712_v50, 0.0  ;;  %v1444_v52 = vpop.f32.mrb[20].mxu1 }
 0x1de   : > { %v727_v54 = vadd.f32 %v1444_v52, %v1276_v16  ;;  %v721_v55 = vpop.f32.mrb[21].mxu1 }
 0x1df   : > { %v722_v56 = vadd.f32 %v1276_v16, %v721_v55  ;;  %1471 = vmatprep.mubr.msk.f32.mxu0 %vm546_vm1, %v750_v51 }
 0x1e0   : > { %1472 = vmatmul.mubr.msk.f32.gmra.mrb[18].mxu0 %vm546_vm1, %v751_v53  ;;  %v753_v59 = vmax.f32 %v727_v54, 0.0 }
 0x1e1   : > { %v752_v57 = vmax.f32 %v722_v56, 0.0  ;;  %v1447_v58 = vpop.f32.mrb[22].mxu1 }
 0x1e2   : > { %v737_v60 = vadd.f32 %v1447_v58, %v1276_v16  ;;  %v731_v61 = vpop.f32.mrb[23].mxu1 }
 0x1e3   : > { %v732_v62 = vadd.f32 %v1276_v16, %v731_v61  ;;  %1474 = vmatprep.mubr.msk.f32.mxu0 %vm546_vm1, %v752_v57 }
 0x1e4   : > { %1475 = vmatmul.mubr.msk.f32.gmra.mrb[20].mxu0 %vm546_vm1, %v753_v59  ;;  %v755_v0 = vmax.f32 %v737_v60, 0.0 }
 0x1e5   : > { %v754_v63 = vmax.f32 %v732_v62, 0.0 }
 0x1e7   : > { %1477 = vmatprep.mubr.msk.f32.mxu0 %vm546_vm1, %v754_v63 }
 0x1e8   : > { %1478 = vmatmul.mubr.msk.f32.gmra.mrb[22].mxu0 %vm546_vm1, %v755_v0 }
 0x29f   : > { %v1458_v2 = vpop.f32.mrb[8].mxu0 }
 0x2a0   : > { %v887_v3 = vadd.f32 %v1458_v2, %v1293_v1  ;;  %v881_v4 = vpop.f32.mrb[9].mxu0 }
 0x2a1   : > { %v882_v5 = vadd.f32 %v1293_v1, %v881_v4 }
 0x2a2   : > { %962 = vst.msk [vmem:[%s1861_s11 + $0x8] sm:$0xff] %vm960_vm2, %v887_v3 }
 0x2a3   : > { %961 = vst.msk [vmem:[%s1861_s11] sm:$0xff] %vm960_vm2, %v882_v5  ;;  %v1461_v6 = vpop.f32.mrb[10].mxu0 }
 0x2a4   : > { %v897_v7 = vadd.f32 %v1461_v6, %v1293_v1  ;;  %v891_v8 = vpop.f32.mrb[11].mxu0 }
 0x2a5   : > { %v892_v9 = vadd.f32 %v1293_v1, %v891_v8 }
 0x2a6   : > { %964 = vst.msk [vmem:[%s1861_s11 + $0x18] sm:$0xff] %vm960_vm2, %v897_v7 }
 0x2a7   : > { %963 = vst.msk [vmem:[%s1861_s11 + $0x10] sm:$0xff] %vm960_vm2, %v892_v9  ;;  %v1464_v10 = vpop.f32.mrb[12].mxu0 }
 0x2a8   : > { %v907_v11 = vadd.f32 %v1464_v10, %v1293_v1  ;;  %v901_v12 = vpop.f32.mrb[13].mxu0 }
 0x2a9   : > { %v902_v13 = vadd.f32 %v1293_v1, %v901_v12 }
 0x2aa   : > { %966 = vst.msk [vmem:[%s1861_s11 + $0x28] sm:$0xff] %vm960_vm2, %v907_v11 }
 0x2ab   : > { %965 = vst.msk [vmem:[%s1861_s11 + $0x20] sm:$0xff] %vm960_vm2, %v902_v13  ;;  %v1467_v14 = vpop.f32.mrb[14].mxu0 }
 0x2ac   : > { %v917_v15 = vadd.f32 %v1467_v14, %v1293_v1  ;;  %v911_v16 = vpop.f32.mrb[15].mxu0 }
 0x2ad   : > { %v912_v17 = vadd.f32 %v1293_v1, %v911_v16 }
 0x2ae   : > { %968 = vst.msk [vmem:[%s1861_s11 + $0x38] sm:$0xff] %vm960_vm2, %v917_v15 }
 0x2af   : > { %967 = vst.msk [vmem:[%s1861_s11 + $0x30] sm:$0xff] %vm960_vm2, %v912_v17  ;;  %v1470_v18 = vpop.f32.mrb[16].mxu0 }
 0x2b0   : > { %v927_v19 = vadd.f32 %v1470_v18, %v1293_v1  ;;  %v921_v20 = vpop.f32.mrb[17].mxu0 }
 0x2b1   : > { %v922_v21 = vadd.f32 %v1293_v1, %v921_v20 }
 0x2b2   : > { %970 = vst.msk [vmem:[%s1861_s11 + $0x48] sm:$0xff] %vm960_vm2, %v927_v19 }
 0x2b3   : > { %969 = vst.msk [vmem:[%s1861_s11 + $0x40] sm:$0xff] %vm960_vm2, %v922_v21  ;;  %v1473_v22 = vpop.f32.mrb[18].mxu0 }
 0x2b4   : > { %v937_v23 = vadd.f32 %v1473_v22, %v1293_v1  ;;  %v931_v24 = vpop.f32.mrb[19].mxu0 }
 0x2b5   : > { %v932_v25 = vadd.f32 %v1293_v1, %v931_v24 }
 0x2b6   : > { %972 = vst.msk [vmem:[%s1861_s11 + $0x58] sm:$0xff] %vm960_vm2, %v937_v23 }
 0x2b7   : > { %971 = vst.msk [vmem:[%s1861_s11 + $0x50] sm:$0xff] %vm960_vm2, %v932_v25  ;;  %v1476_v26 = vpop.f32.mrb[20].mxu0 }
 0x2b8   : > { %v947_v27 = vadd.f32 %v1476_v26, %v1293_v1  ;;  %v941_v28 = vpop.f32.mrb[21].mxu0 }
 0x2b9   : > { %v942_v29 = vadd.f32 %v1293_v1, %v941_v28  ;;  %983 = sbr.rel (!%p1743_p4) target bundleno = 753 (0x2f1), region = 52 }
 0x2ba   : > { %974 = vst.msk [vmem:[%s1861_s11 + $0x68] sm:$0xff] %vm960_vm2, %v947_v27 }
 0x2bb   : > { %973 = vst.msk [vmem:[%s1861_s11 + $0x60] sm:$0xff] %vm960_vm2, %v942_v29  ;;  %v1479_v30 = vpop.f32.mrb[22].mxu0 }
 0x2bc   : > { %v957_v31 = vadd.f32 %v1479_v30, %v1293_v1  ;;  %v951_v32 = vpop.f32.mrb[23].mxu0 }
 0x2bd   : > { %v952_v33 = vadd.f32 %v1293_v1, %v951_v32 }
 0x2be   : > { %976 = vst.msk [vmem:[%s1861_s11 + $0x78] sm:$0xff] %vm960_vm2, %v957_v31 }
 0x2bf   : > { %975 = vst.msk [vmem:[%s1861_s11 + $0x70] sm:$0xff] %vm960_vm2, %v952_v33 }
 0x2c0   : > { %s2011_s24 = smov (!%p986_p8, %s985_s24), 16 }
 0x2c1   : > { %s1312_s17 = sshll.u32 %s2011_s24, 7 }
 0x2c2   : > { %p1315_p9 = scmp.eq.s32.totalorder %s1312_s17, 0 }
 0x2c3   : > { %s1908_s18 = sshrl.u32 (!%p1315_p9), %s2011_s24, 4 }
 0x2c4   : > { %994 = sbr.rel (%p1315_p9) target bundleno = 753 (0x2f1), region = 56  ;;  %p1316_p10 = scmp.le.s32.totalorder (!%p1315_p9), %s1908_s18, 0 }
 0x2cb   : > { %1208 = sbr.rel (%p1316_p10) target bundleno = 732 (0x2dc), region = 132  ;;  %s2004_s27 = smov (!%p1316_p10), %s1902_s16 }
 0x2cc   : > { %s2005_s9 = smov (!%p1316_p10), %s1861_s11  ;;  %s1917_s14 = smov (!%p1316_p10), 0  }
 0x2cd   : > { %s1919_s19 = smov (!%p1316_p10), 0  }
 0x2d2 LB: >> { %v1086_v34 = vld [vmem:[%s1652_s9] sm:$0xff]  ;;  %v1088_v35 = vld [vmem:[%s1652_s9 + $0x8] sm:$0xff]  ;;  %v1090_v36 = vld [vmem:[%s1652_s9 + $0x10] sm:$0xff]  ;;  %s1118_s20 = sadd.s32 1, %s1656_s14  ;;  %s1080_s19 = sadd.s32 1, %s1660_s19   ;;  %s1660_s19 = sphi %s1919_s19, %s1080_s19   ;;  %s1656_s14 = sphi %s1917_s14, %s2006_s14   ;;  %s1652_s9 = sphi %s2005_s9, %s1123_s9   ;;  %s1648_s27 = sphi %s2004_s27, %s1124_s27  }
 0x2d3   : >> { %1087 = vst [vmem:[%s1648_s27] sm:$0xff] %v1086_v34  ;;  %1089 = vst [vmem:[%s1648_s27 + $0x8] sm:$0xff] %v1088_v35  ;;  %v1092_v37 = vld [vmem:[%s1652_s9 + $0x18] sm:$0xff]  ;;  %v1094_v38 = vld [vmem:[%s1652_s9 + $0x20] sm:$0xff]  ;;  %p1119_p11 = scmp.ge.s32.totalorder %s1118_s20, %s1908_s18  ;;  %p1079_p12 = scmp.ge.s32.totalorder %s1080_s19, %s1908_s18 }
 0x2d4   : >> { %1091 = vst [vmem:[%s1648_s27 + $0x10] sm:$0xff] %v1090_v36  ;;  %v1096_v39 = vld [vmem:[%s1652_s9 + $0x28] sm:$0xff]  ;;  %1093 = vst [vmem:[%s1648_s27 + $0x18] sm:$0xff] %v1092_v37  ;;  %v1098_v40 = vld [vmem:[%s1652_s9 + $0x30] sm:$0xff] }
 0x2d5   : >> { %1095 = vst [vmem:[%s1648_s27 + $0x20] sm:$0xff] %v1094_v38  ;;  %1097 = vst [vmem:[%s1648_s27 + $0x28] sm:$0xff] %v1096_v39  ;;  %v1100_v41 = vld [vmem:[%s1652_s9 + $0x38] sm:$0xff]  ;;  %v1102_v42 = vld [vmem:[%s1652_s9 + $0x40] sm:$0xff]  ;;  %s2013_s20 = smov (%p1119_p11, %s1118_s20), 0  ;;  %1082 = sbr.rel (!%p1079_p12) target bundleno = 722 (0x2d2), region = 138 }
 0x2d6   : >> { %1099 = vst [vmem:[%s1648_s27 + $0x30] sm:$0xff] %v1098_v40  ;;  %1101 = vst [vmem:[%s1648_s27 + $0x38] sm:$0xff] %v1100_v41  ;;  %v1104_v43 = vld [vmem:[%s1652_s9 + $0x48] sm:$0xff]  ;;  %v1106_v44 = vld [vmem:[%s1652_s9 + $0x50] sm:$0xff]  ;;  %s1317_s21 = sshll.u32 %s2013_s20, 7  ;;  %s2006_s14 = smov %s2013_s20 }
 0x2d7   : >> { %1103 = vst [vmem:[%s1648_s27 + $0x40] sm:$0xff] %v1102_v42  ;;  %v1108_v45 = vld [vmem:[%s1652_s9 + $0x58] sm:$0xff]  ;;  %1105 = vst [vmem:[%s1648_s27 + $0x48] sm:$0xff] %v1104_v43  ;;  %v1110_v46 = vld [vmem:[%s1652_s9 + $0x60] sm:$0xff] }
 0x2d8   : >> { %1107 = vst [vmem:[%s1648_s27 + $0x50] sm:$0xff] %v1106_v44  ;;  %1109 = vst [vmem:[%s1648_s27 + $0x58] sm:$0xff] %v1108_v45  ;;  %v1112_v47 = vld [vmem:[%s1652_s9 + $0x68] sm:$0xff]  ;;  %v1114_v48 = vld [vmem:[%s1652_s9 + $0x70] sm:$0xff] }
 0x2d9   : >> { %1111 = vst [vmem:[%s1648_s27 + $0x60] sm:$0xff] %v1110_v46  ;;  %1113 = vst [vmem:[%s1648_s27 + $0x68] sm:$0xff] %v1112_v47  ;;  %v1116_v49 = vld [vmem:[%s1652_s9 + $0x78] sm:$0xff]  ;;  %s1123_s9 = scalar_lea.vmem %s1861_s11, %s1317_s21 [#allocation2]  }
 0x2da   : >> { %1115 = vst [vmem:[%s1648_s27 + $0x70] sm:$0xff] %v1114_v48  ;;  %1117 = vst [vmem:[%s1648_s27 + $0x78] sm:$0xff] %v1116_v49  ;;  %s1124_s27 = scalar_lea.vmem %s1902_s16, %s1317_s21  }
 0x2dc PF: > { %s1977_s22 = sand.u32 15, %s2011_s24   ;;  %s1328_s23 = sshll.u32 %s1908_s18, 7 }
 0x2dd   : > { %s1129_s26 = scalar_lea.vmem %s1861_s11, %s1328_s23 [#allocation2]   ;;  %s1131_s29 = scalar_lea.vmem %s1902_s16, %s1328_s23  }
 0x2de   : > { %p1322_p13 = scmp.le.s32.totalorder %s1977_s22, 0 }
 0x2df   : > { %s1662_s30 = smov (!%p1322_p13), %s1131_s29   ;;  %s1666_s10 = smov (!%p1322_p13), %s1129_s26  }
 0x2e0   : > { %1222 = sbr.rel (%p1322_p13) target bundleno = 753 (0x2f1), region = 143  ;;  %s1670_s12 = smov (!%p1322_p13), 0  }
 0x2e1   : > { %s1674_s13 = smov (!%p1322_p13), 0  }
 0x2e7 LB: >> { %v1141_v50 = vld [vmem:[%s1668_s10] sm:$0xff]  ;;  %s1143_s24 = sadd.s32 1, %s1672_s12  ;;  %s1135_s13 = sadd.s32 1, %s1676_s13   ;;  %s1676_s13 = sphi %s1674_s13, %s1135_s13   ;;  %s1672_s12 = sphi %s1670_s12, %s1671_s12   ;;  %s1668_s10 = sphi %s1666_s10, %s1148_s10   ;;  %s1664_s30 = sphi %s1662_s30, %s1149_s30  }
 0x2e8   : >> { %1142 = vst [vmem:[%s1664_s30] sm:$0xff] %v1141_v50  ;;  %p1144_p0 = scmp.ge.s32.totalorder %s1143_s24, %s1977_s22  ;;  %p1134_p1 = scmp.ge.s32.totalorder %s1135_s13, %s1977_s22 }
 0x2ea   : >> { %s2015_s24 = smov (%p1144_p0, %s1143_s24), 0  ;;  %1137 = sbr.rel (!%p1134_p1) target bundleno = 743 (0x2e7), region = 149 }
 0x2eb   : >> { %s1323_s11 = sshll.u32 %s2015_s24, 3  ;;  %s1671_s12 = smov %s2015_s24  }
 0x2ec   : >> { %s1148_s10 = scalar_lea.vmem %s1129_s26, %s1323_s11 [#allocation2]   ;;  %s1149_s30 = scalar_lea.vmem %s1131_s29, %s1323_s11  }
 0x2f1 PF: > { %p14_p2 = scmp.ge.s32.totalorder %s1733_s28, 7   ;;  %s2007_s24 = smov %s1640_s25 }
 0x2f2   : > { %s2008_s25 = smov %s1741_s8  ;;  %s2009_s26 = smov %s1733_s28 }
 0x2f3   :  { %16 = sbr.rel (!%p14_p2) target bundleno = 2 (0x2), region = 160 }

</bundles_post_ra>
